<compile_context>
chip_gen: v5e
topology: v5e:2x2
jax: 0.10.0
libtpu: 0.0.40
codegen_flags: <defaults>
</compile_context>

<pallas_src>
import functools

import jax
import jax.numpy as jnp
from jax.experimental import pallas as pl
from jax.experimental.pallas import tpu as pltpu

_LANE = 128
_SUB = 8


def _round_up(x, m):
    return ((x + m - 1) // m) * m


def _vmem_capacity_bytes(default=64 << 20):
    """Best-effort physical VMEM query; falls back to a conservative 64 MiB."""
    try:
        info = pltpu.get_tpu_info()
        for attr in ("vmem_capacity_bytes", "vmem_bytes", "vmem_size_bytes"):
            v = getattr(info, attr, None)
            if v:
                return int(v)
    except Exception:
        pass
    return default


def _choose_tile(B, D_in, H, D_out, block_b):
    """Pick the batch tile TB (multiple of 128 lanes) from the VMEM budget."""
    b_pad128 = _round_up(max(B, 1), _LANE)

    # Per-generation scoped-VMEM budget: v5e/v6e (128 MiB phys) -> 64 MiB,
    # v7x (64 MiB phys) -> 32 MiB; never below v5e's 16 MiB scoped default.
    vmem_cap = _vmem_capacity_bytes()
    vmem_limit = max(16 << 20, min(vmem_cap // 2, 64 << 20))

    if block_b is not None:  # explicit override (used in tests)
        tb = min(_round_up(block_b, _LANE), b_pad128)
        return tb, _round_up(b_pad128, tb), vmem_limit

    # VMEM bytes per batch row: double-buffered x tile (lane-padded D_in),
    # the (H, TB) f32 hidden temporary, and the double-buffered (D_out, TB) out.
    d_in_pad = _round_up(D_in, _LANE)
    per_row = 4 * (2 * d_in_pad + _round_up(H, _SUB) + 2 * _round_up(D_out, _SUB))
    # VMEM-resident weights/biases (assume 2 buffers each), lane/sublane padded.
    weights = 2 * 4 * (_round_up(H, _SUB) * d_in_pad
                       + _round_up(H, _SUB) * _LANE
                       + _round_up(D_out, _SUB) * _round_up(H, _LANE)
                       + _round_up(D_out, _SUB) * _LANE)
    budget = vmem_limit - weights - (4 << 20)  # headroom for compiler scratch
    tb_cap = max(_LANE, (budget // max(per_row, 1)) // _LANE * _LANE)
    tb_cap = min(tb_cap, 16384)
    # TODO(synk): if weights alone overflow VMEM (huge D_in*H), fc1 would need
    # K-tiling; not needed at the hidden_size=128 scale of this module.

    # Keep >= 2 grid steps for large batches so the "parallel" axis can split
    # across v7x's two TensorCores (costs one extra ~0.35 us step elsewhere).
    tb = min(tb_cap, max(_LANE, _round_up(pl.cdiv(b_pad128, 2), _LANE)))
    return tb, _round_up(b_pad128, tb), vmem_limit


def _mlp_kernel(x_ref, w1_ref, b1_ref, w2_ref, b2_ref, o_ref):
    # x_ref : (TB, D_in)  batch tile (rows = batch, cols = features), streamed
    # w1_ref: (H, D_in)   fc1.weight (PyTorch layout), VMEM-resident
    # b1_ref: (H, 1)
    # w2_ref: (H, 1) if D_out == 1 else (D_out, H)
    # b2_ref: (D_out, 1)
    # o_ref : (D_out, TB) lane-dense output tile (batch on lanes)

    # fc1, transposed: hT[j, b] = sum_d W1[j, d] * x[b, d]  -> (H, TB), f32 acc.
    ht = jax.lax.dot_general(
        w1_ref[...], x_ref[...],
        dimension_numbers=(((1,), (1,)), ((), ())),
        preferred_element_type=jnp.float32)
    ht = jnp.maximum(ht + b1_ref[...], 0.0)

    if o_ref.shape[0] == 1:
        # Single-output fc2: VPU multiply + sublane reduction over H; keeps the
        # MXU out of a 1-column matvec and yields a lane-dense (1, TB) directly.
        o = jnp.sum(ht * w2_ref[...], axis=0, keepdims=True)
    else:
        # General fc2: oT = W2 (D_out, H) @ hT (H, TB) -> (D_out, TB) on MXU.
        o = jnp.dot(w2_ref[...], ht, preferred_element_type=jnp.float32)

    o_ref[...] = (o + b2_ref[...]).astype(o_ref.dtype)


@functools.partial(jax.jit, static_argnames=("block_b",))
def simple_nn_regressor(x, w1, b1, w2, b2, *, block_b=None):
    """Forward pass of SimpleNNRegressor: fc2(relu(fc1(x))).

    x : (B, D_in), any float dtype (cast to f32, mirroring `x.float()`).
    w1: (H, D_in),  b1: (H,)      -- PyTorch nn.Linear layouts
    w2: (D_out, H), b2: (D_out,)
    Returns (B, D_out) float32.
    """
    x = x.astype(jnp.float32)
    B, D_in = x.shape
    H = w1.shape[0]
    D_out = w2.shape[0]

    tb, b_padded, vmem_limit = _choose_tile(B, D_in, H, D_out, block_b)
    if b_padded != B:
        x = jnp.pad(x, ((0, b_padded - B), (0, 0)))

    w1_f = w1.astype(jnp.float32)
    b1_f = b1.reshape(H, 1).astype(jnp.float32)
    b2_f = b2.reshape(D_out, 1).astype(jnp.float32)
    if D_out == 1:
        w2_f = w2.reshape(H, 1).astype(jnp.float32)          # column for VPU path
        w2_spec = pl.BlockSpec((H, 1), lambda i: (0, 0))
    else:
        w2_f = w2.astype(jnp.float32)                        # (D_out, H) NN matmul
        w2_spec = pl.BlockSpec((D_out, H), lambda i: (0, 0))

    grid = (b_padded // tb,)

    out_t = pl.pallas_call(
        _mlp_kernel,
        out_shape=jax.ShapeDtypeStruct((D_out, b_padded), jnp.float32),
        grid_spec=pltpu.PrefetchScalarGridSpec(
            num_scalar_prefetch=0,
            grid=grid,
            in_specs=[
                # x: streamed over the batch; auto double-buffered by Pallas.
                pl.BlockSpec((tb, D_in), lambda i: (i, 0)),
                # Weights / biases: constant index_map -> resident in VMEM.
                pl.BlockSpec((H, D_in), lambda i: (0, 0)),
                pl.BlockSpec((H, 1), lambda i: (0, 0)),
                w2_spec,
                pl.BlockSpec((D_out, 1), lambda i: (0, 0)),
            ],
            # Lane-dense output: each grid step writes a (D_out, TB) slab.
            out_specs=pl.BlockSpec((D_out, tb), lambda i: (0, i)),
        ),
        compiler_params=pltpu.CompilerParams(
            dimension_semantics=("parallel",),
            vmem_limit_bytes=int(vmem_limit),
        ),
    )(x, w1_f, b1_f, w2_f, b2_f)

    out_t = out_t[:, :B] if b_padded != B else out_t
    return jnp.transpose(out_t)


def init_params(key, input_size, hidden_size=128, output_size=1):
    """nn.Linear-style init in PyTorch layouts: W (out, in), b (out,)."""
    k1, k2, k3, k4 = jax.random.split(key, 4)
    bound1 = 1.0 / jnp.sqrt(jnp.float32(input_size))
    bound2 = 1.0 / jnp.sqrt(jnp.float32(hidden_size))
    w1 = jax.random.uniform(k1, (hidden_size, input_size), jnp.float32, -bound1, bound1)
    b1 = jax.random.uniform(k2, (hidden_size,), jnp.float32, -bound1, bound1)
    w2 = jax.random.uniform(k3, (output_size, hidden_size), jnp.float32, -bound2, bound2)
    b2 = jax.random.uniform(k4, (output_size,), jnp.float32, -bound2, bound2)
    return w1, b1, w2, b2


def _ref_fwd(x, w1, b1, w2, b2):
    h = jnp.maximum(x.astype(jnp.float32) @ w1.T + b1, 0.0)
    return h @ w2.T + b2


if __name__ == "__main__":
    key = jax.random.PRNGKey(0)
    kx, kp, kx2, kp2 = jax.random.split(key, 4)

    # Module-default sizes at a small batch: input_size=32, hidden=128, out=1.
    B, D_in, H, D_out = 8, 32, 128, 1
    x = jax.random.normal(kx, (B, D_in), jnp.float32)
    w1, b1, w2, b2 = init_params(kp, D_in, H, D_out)

    ref = _ref_fwd(x, w1, b1, w2, b2)
    out = jax.block_until_ready(simple_nn_regressor(x, w1, b1, w2, b2))
    assert out.shape == (B, D_out)
    assert jnp.allclose(out, ref, atol=1e-4, rtol=1e-4)

    # Multi-tile grid + batch padding (B not a multiple of the 128-lane tile).
    B2 = 300
    x2 = jax.random.normal(kx2, (B2, D_in), jnp.float32)
    ref2 = _ref_fwd(x2, w1, b1, w2, b2)
    out2 = jax.block_until_ready(
        simple_nn_regressor(x2, w1, b1, w2, b2, block_b=128))
    assert out2.shape == (B2, D_out)
    assert jnp.allclose(out2, ref2, atol=1e-4, rtol=1e-4)

    # General D_out > 1 branch (MXU fc2 path).
    D_out3 = 4
    w13, b13, w23, b23 = init_params(kp2, D_in, H, D_out3)
    ref3 = _ref_fwd(x, w13, b13, w23, b23)
    out3 = jax.block_until_ready(simple_nn_regressor(x, w13, b13, w23, b23))
    assert out3.shape == (B, D_out3)
    assert jnp.allclose(out3, ref3, atol=1e-4, rtol=1e-4)

    print("KERNEL_OK")
</pallas_src>

<mosaic_0001>
module attributes {stable_mosaic.version = 11 : i64} {
  func.func @_mlp_kernel(%arg0: i32, %arg1: memref<128x32xf32, #tpu.memory_space<vmem>>, %arg2: memref<128x32xf32, #tpu.memory_space<vmem>>, %arg3: memref<128x1xf32, #tpu.memory_space<vmem>>, %arg4: memref<128x1xf32, #tpu.memory_space<vmem>>, %arg5: memref<1x1xf32, #tpu.memory_space<vmem>>, %arg6: memref<1x128xf32, #tpu.memory_space<vmem>>) attributes {dimension_semantics = [#tpu.dimension_semantics<parallel>], iteration_bounds = array<i64: 1>, scalar_prefetch = 0 : i64, scratch_operands = 0 : i64, tpu.core_type = #tpu.core_type<tc>, window_params = [{transform_indices = @transform_0, window_bounds = array<i64: 128, 32>}, {pipeline_mode = #tpu.pipeline_mode<synchronous>, transform_indices = @transform_1, window_bounds = array<i64: 128, 32>}, {pipeline_mode = #tpu.pipeline_mode<synchronous>, transform_indices = @transform_2, window_bounds = array<i64: 128, 1>}, {pipeline_mode = #tpu.pipeline_mode<synchronous>, transform_indices = @transform_3, window_bounds = array<i64: 128, 1>}, {pipeline_mode = #tpu.pipeline_mode<synchronous>, transform_indices = @transform_4, window_bounds = array<i64: 1, 1>}, {transform_indices = @transform_5, window_bounds = array<i64: 1, 128>}]} {
    %c0 = arith.constant 0 : index
    %c0_0 = arith.constant 0 : index
    %0 = vector.load %arg2[%c0, %c0_0] : memref<128x32xf32, #tpu.memory_space<vmem>>, vector<128x32xf32>
    %c0_1 = arith.constant 0 : index
    %c0_2 = arith.constant 0 : index
    %1 = vector.load %arg1[%c0_1, %c0_2] : memref<128x32xf32, #tpu.memory_space<vmem>>, vector<128x32xf32>
    %cst = arith.constant dense<0.000000e+00> : vector<128x128xf32>
    %2 = tpu.matmul %0, %1, %cst {dimension_numbers = #tpu.dot_dimension_numbers<[1], [1], [0], [0], [0, 0, 1, 0], [], []>} : vector<128x32xf32>, vector<128x32xf32>, vector<128x128xf32> -> vector<128x128xf32>
    %c0_3 = arith.constant 0 : index
    %c0_4 = arith.constant 0 : index
    %3 = vector.load %arg3[%c0_3, %c0_4] : memref<128x1xf32, #tpu.memory_space<vmem>>, vector<128x1xf32>
    %4 = vector.broadcast %3 : vector<128x1xf32> to vector<128x128xf32>
    %5 = arith.addf %2, %4 : vector<128x128xf32>
    %cst_5 = arith.constant 0.000000e+00 : f32
    %6 = vector.broadcast %cst_5 : f32 to vector<128x128xf32>
    %7 = arith.maximumf %5, %6 : vector<128x128xf32>
    %c0_6 = arith.constant 0 : index
    %c0_7 = arith.constant 0 : index
    %8 = vector.load %arg4[%c0_6, %c0_7] : memref<128x1xf32, #tpu.memory_space<vmem>>, vector<128x1xf32>
    %9 = vector.broadcast %8 : vector<128x1xf32> to vector<128x128xf32>
    %10 = arith.mulf %7, %9 : vector<128x128xf32>
    %cst_8 = arith.constant dense<0.000000e+00> : vector<128xf32>
    %11 = vector.multi_reduction <add>, %10, %cst_8 [0] : vector<128x128xf32> to vector<128xf32>
    %12 = vector.shape_cast %11 : vector<128xf32> to vector<1x128xf32>
    %c0_9 = arith.constant 0 : index
    %c0_10 = arith.constant 0 : index
    %13 = vector.load %arg5[%c0_9, %c0_10] : memref<1x1xf32, #tpu.memory_space<vmem>>, vector<1x1xf32>
    %14 = vector.broadcast %13 : vector<1x1xf32> to vector<1x128xf32>
    %15 = arith.addf %12, %14 : vector<1x128xf32>
    %c0_11 = arith.constant 0 : index
    %c0_12 = arith.constant 0 : index
    %16 = vector.load %arg6[%c0_11, %c0_12] : memref<1x128xf32, #tpu.memory_space<vmem>>, vector<1x128xf32>
    tpu.vector_store %arg6[%c0_11, %c0_12], %15 {strides = array<i32>} : memref<1x128xf32, #tpu.memory_space<vmem>>, vector<1x128xf32>,
    return
  }
  func.func @transform_0(%arg0: i32) -> (i32, i32) {
    %c0_i32 = arith.constant 0 : i32
    %c0_i32_0 = arith.constant 0 : i32
    return %arg0, %c0_i32 : i32, i32
  }
  func.func @transform_1(%arg0: i32) -> (i32, i32) {
    %c0_i32 = arith.constant 0 : i32
    %c0_i32_0 = arith.constant 0 : i32
    %c0_i32_1 = arith.constant 0 : i32
    return %c0_i32, %c0_i32_0 : i32, i32
  }
  func.func @transform_2(%arg0: i32) -> (i32, i32) {
    %c0_i32 = arith.constant 0 : i32
    %c0_i32_0 = arith.constant 0 : i32
    %c0_i32_1 = arith.constant 0 : i32
    return %c0_i32, %c0_i32_0 : i32, i32
  }
  func.func @transform_3(%arg0: i32) -> (i32, i32) {
    %c0_i32 = arith.constant 0 : i32
    %c0_i32_0 = arith.constant 0 : i32
    %c0_i32_1 = arith.constant 0 : i32
    return %c0_i32, %c0_i32_0 : i32, i32
  }
  func.func @transform_4(%arg0: i32) -> (i32, i32) {
    %c0_i32 = arith.constant 0 : i32
    %c0_i32_0 = arith.constant 0 : i32
    %c0_i32_1 = arith.constant 0 : i32
    return %c0_i32, %c0_i32_0 : i32, i32
  }
  func.func @transform_5(%arg0: i32) -> (i32, i32) {
    %c0_i32 = arith.constant 0 : i32
    %c0_i32_0 = arith.constant 0 : i32
    return %c0_i32, %arg0 : i32, i32
  }
}

</mosaic_0001>

<bundles_post_ra>
// kernel: simple_nn_regressor.1
= control target key start
LH: loop header
LB: loop body
LE: loop exit
PB: predicated region body
PF: predicated region fallthrough
CT: control target
= control target key end

     0   :  { %v558_v0 = vmov 0   ;;  %vm150_vm0 = vcmask 261120   ;;  %s882_s2 = inlined_call_operand.vmem [shape: f32[128,1], index: 2, kind: input, shape index: {}]   ;;  %s883_s0 = inlined_call_operand.vmem [shape: f32[128,32], index: 0, kind: input, shape index: {}]   ;;  %s884_s3 = inlined_call_operand.vmem [shape: f32[128,1], index: 3, kind: input, shape index: {}]   ;;  %s885_s4 = inlined_call_operand.<no memory space> [shape: f32[1,1], index: 4, kind: input, shape index: {}]   ;;  %s886_s1 = inlined_call_operand.vmem [shape: f32[128,32], index: 1, kind: input, shape index: {}]   ;;  %s887_s5 = inlined_call_operand.vmem [shape: f32[1,128], index: 5, kind: output, shape index: {}]  }
   0x1   :  { %557 = vset.pattern.permute.xlu2 %v558_v0  ;;  %556 = vset.pattern.permute.xlu1 %v558_v0  ;;  %v58_v1 = vld [vmem:[%s882_s2 + $0x20] sm:$0xff]  ;;  %v56_v2 = vld [vmem:[%s882_s2 + $0x10] sm:$0xff]  ;;  %v53_v4 = vld [vmem:[%s883_s0 + $0x78] sm:$0xff]  ;;  %v10_v30 = vstv %s885_s4 }
   0x2   :  { %v54_v3 = vld [vmem:[%s882_s2] sm:$0xff]  ;;  %555 = vset.pattern.permute.xlu0 %v558_v0  ;;  %92 = vperm.xlu2 %557, %v58_v1   ;;  %v52_v5 = vld [vmem:[%s883_s0 + $0x70] sm:$0xff]  ;;  %v59_v6 = vld [vmem:[%s882_s2 + $0x28] sm:$0xff]  ;;  %11 = vst [vmem:[#allocation2] sm:$0x1] %v10_v30 }
   0x3   :  { %82 = vperm.xlu1 %556, %v56_v2   ;;  %72 = vperm.xlu0 %555, %v54_v3   ;;  %v57_v7 = vld [vmem:[%s882_s2 + $0x18] sm:$0xff]  ;;  %v55_v8 = vld [vmem:[%s882_s2 + $0x8] sm:$0xff]  ;;  %v50_v10 = vld [vmem:[%s883_s0 + $0x60] sm:$0xff] }
   0x4   :  { %474 = vmatpush.xpose.msk.msra.mxu0 %vm150_vm0, %v53_v4  ;;  %506 = vmatpush.xpose.msk.msra.mxu1 %vm150_vm0, %v53_v4  ;;  %v51_v9 = vld [vmem:[%s883_s0 + $0x68] sm:$0xff]  ;;  %v62_v11 = vld [vmem:[%s882_s2 + $0x40] sm:$0xff]  ;;  %v61_v12 = vld [vmem:[%s882_s2 + $0x38] sm:$0xff] }
   0x5   :  { %507 = vmatpush.xpose.msk.msra.mxu2 %vm150_vm0, %v53_v4  ;;  %508 = vmatpush.xpose.msk.msra.mxu3 %vm150_vm0, %v53_v4  ;;  %v60_v13 = vld [vmem:[%s882_s2 + $0x30] sm:$0xff]  ;;  %v49_v14 = vld [vmem:[%s883_s0 + $0x58] sm:$0xff]  ;;  %v63_v18 = vld [vmem:[%s882_s2 + $0x48] sm:$0xff] }
   0x6   :  { %v48_v15 = vld [vmem:[%s883_s0 + $0x50] sm:$0xff]  ;;  %v65_v16 = vld [vmem:[%s882_s2 + $0x58] sm:$0xff]  ;;  %v47_v19 = vld [vmem:[%s883_s0 + $0x48] sm:$0xff] }
   0x7   :  { %v64_v17 = vld [vmem:[%s882_s2 + $0x50] sm:$0xff]  ;;  %v46_v20 = vld [vmem:[%s883_s0 + $0x40] sm:$0xff]  ;;  %v67_v22 = vld [vmem:[%s882_s2 + $0x68] sm:$0xff] }
   0x8   :  { %475 = vmatpush.xpose.msk.msra.mxu0 %vm150_vm0, %v52_v5  ;;  %509 = vmatpush.xpose.msk.msra.mxu1 %vm150_vm0, %v52_v5  ;;  %v68_v21 = vld [vmem:[%s882_s2 + $0x70] sm:$0xff]  ;;  %v66_v23 = vld [vmem:[%s882_s2 + $0x60] sm:$0xff]  ;;  %v45_v24 = vld [vmem:[%s883_s0 + $0x38] sm:$0xff] }
   0x9   :  { %510 = vmatpush.xpose.msk.msra.mxu2 %vm150_vm0, %v52_v5  ;;  %511 = vmatpush.xpose.msk.msra.mxu3 %vm150_vm0, %v52_v5  ;;  %v44_v25 = vld [vmem:[%s883_s0 + $0x30] sm:$0xff]  ;;  %v329_v26 = vld [vmem:[%s884_s3 + $0x8] sm:$0xff]  ;;  %v328_v27 = vld [vmem:[%s884_s3] sm:$0xff] }
   0xa   :  { %97 = vperm.xlu2 %557, %v59_v6   ;;  %v69_v28 = vld [vmem:[%s882_s2 + $0x78] sm:$0xff]  ;;  %v43_v29 = vld [vmem:[%s883_s0 + $0x28] sm:$0xff]  ;;  %v42_v31 = vld [vmem:[%s883_s0 + $0x20] sm:$0xff] }
   0xb   :  { %87 = vperm.xlu1 %556, %v57_v7   ;;  %77 = vperm.xlu0 %555, %v55_v8   ;;  %v332_v32 = vld [vmem:[%s884_s3 + $0x20] sm:$0xff]  ;;  %v331_v33 = vld [vmem:[%s884_s3 + $0x18] sm:$0xff]  ;;  %v330_v34 = vld [vmem:[%s884_s3 + $0x10] sm:$0xff] }
   0xc   :  { %476 = vmatpush.xpose.msk.msra.mxu0 %vm150_vm0, %v51_v9  ;;  %512 = vmatpush.xpose.msk.msra.mxu1 %vm150_vm0, %v51_v9  ;;  %v41_v35 = vld [vmem:[%s883_s0 + $0x18] sm:$0xff]  ;;  %v40_v36 = vld [vmem:[%s883_s0 + $0x10] sm:$0xff]  ;;  %v333_v39 = vld [vmem:[%s884_s3 + $0x28] sm:$0xff] }
   0xd   :  { %513 = vmatpush.xpose.msk.msra.mxu2 %vm150_vm0, %v51_v9  ;;  %514 = vmatpush.xpose.msk.msra.mxu3 %vm150_vm0, %v51_v9  ;;  %v335_v37 = vld [vmem:[%s884_s3 + $0x38] sm:$0xff]  ;;  %v334_v38 = vld [vmem:[%s884_s3 + $0x30] sm:$0xff]  ;;  %v39_v40 = vld [vmem:[%s883_s0 + $0x8] sm:$0xff] }
   0xe   :  { %v38_v41 = vld [vmem:[%s883_s0] sm:$0xff]  ;;  %v338_v42 = vld [vmem:[%s884_s3 + $0x50] sm:$0xff]  ;;  %v337_v47 = vld [vmem:[%s884_s3 + $0x48] sm:$0xff] }
   0xf   :  { %v22_v43 = vld [vmem:[%s886_s1] sm:$0xff]  ;;  %v341_v49 = vld [vmem:[%s884_s3 + $0x68] sm:$0xff]  ;;  %v339_v55 = vld [vmem:[%s884_s3 + $0x58] sm:$0xff] }
  0x10   :  { %477 = vmatpush.xpose.msk.msra.mxu0 %vm150_vm0, %v50_v10  ;;  %515 = vmatpush.xpose.msk.msra.mxu1 %vm150_vm0, %v50_v10  ;;  %v26_v44 = vld [vmem:[%s886_s1 + $0x20] sm:$0xff]  ;;  %v23_v50 = vld [vmem:[%s886_s1 + $0x8] sm:$0xff]  ;;  %v24_v57 = vld [vmem:[%s886_s1 + $0x10] sm:$0xff] }
  0x11   :  { %516 = vmatpush.xpose.msk.msra.mxu2 %vm150_vm0, %v50_v10  ;;  %517 = vmatpush.xpose.msk.msra.mxu3 %vm150_vm0, %v50_v10  ;;  %v30_v45 = vld [vmem:[%s886_s1 + $0x40] sm:$0xff]  ;;  %v27_v51 = vld [vmem:[%s886_s1 + $0x28] sm:$0xff]  ;;  %v28_v58 = vld [vmem:[%s886_s1 + $0x30] sm:$0xff] }
  0x12   :  { %112 = vperm.xlu2 %557, %v62_v11   ;;  %v34_v46 = vld [vmem:[%s886_s1 + $0x60] sm:$0xff]  ;;  %v31_v52 = vld [vmem:[%s886_s1 + $0x48] sm:$0xff]  ;;  %v32_v59 = vld [vmem:[%s886_s1 + $0x50] sm:$0xff] }
  0x13   :  { %107 = vperm.xlu1 %556, %v61_v12   ;;  %102 = vperm.xlu0 %555, %v60_v13   ;;  %v336_v48 = vld [vmem:[%s884_s3 + $0x40] sm:$0xff]  ;;  %v35_v53 = vld [vmem:[%s886_s1 + $0x68] sm:$0xff]  ;;  %v36_v60 = vld [vmem:[%s886_s1 + $0x70] sm:$0xff] }
  0x14   :  { %478 = vmatpush.xpose.msk.msra.mxu0 %vm150_vm0, %v49_v14  ;;  %518 = vmatpush.xpose.msk.msra.mxu1 %vm150_vm0, %v49_v14  ;;  %v340_v54 = vld [vmem:[%s884_s3 + $0x60] sm:$0xff]  ;;  %v343_v61 = vld [vmem:[%s884_s3 + $0x78] sm:$0xff]  ;;  %v342_v62 = vld [vmem:[%s884_s3 + $0x70] sm:$0xff] }
  0x15   :  { %519 = vmatpush.xpose.msk.msra.mxu2 %vm150_vm0, %v49_v14  ;;  %520 = vmatpush.xpose.msk.msra.mxu3 %vm150_vm0, %v49_v14  ;;  %v461_v56 = vld [vmem:[#allocation2] sm:$0x1]  ;;  %v25_v63 = vld [vmem:[%s886_s1 + $0x18] sm:$0xff] }
  0x16   :  { %v29_v0 = vld [vmem:[%s886_s1 + $0x38] sm:$0xff] }
  0x17   :  { %v33_v1 = vld [vmem:[%s886_s1 + $0x58] sm:$0xff] }
  0x18   :  { %479 = vmatpush.xpose.msk.msra.mxu0 %vm150_vm0, %v48_v15  ;;  %521 = vmatpush.xpose.msk.msra.mxu1 %vm150_vm0, %v48_v15  ;;  %v37_v2 = vld [vmem:[%s886_s1 + $0x78] sm:$0xff] }
  0x19   :  { %522 = vmatpush.xpose.msk.msra.mxu2 %vm150_vm0, %v48_v15  ;;  %523 = vmatpush.xpose.msk.msra.mxu3 %vm150_vm0, %v48_v15 }
  0x1a   :  { %127 = vperm.xlu2 %557, %v65_v16  }
  0x1b   :  { %122 = vperm.xlu1 %556, %v64_v17   ;;  %117 = vperm.xlu0 %555, %v63_v18  }
  0x1c   :  { %480 = vmatpush.xpose.msk.msra.mxu0 %vm150_vm0, %v47_v19  ;;  %524 = vmatpush.xpose.msk.msra.mxu1 %vm150_vm0, %v47_v19 }
  0x1d   :  { %525 = vmatpush.xpose.msk.msra.mxu2 %vm150_vm0, %v47_v19  ;;  %526 = vmatpush.xpose.msk.msra.mxu3 %vm150_vm0, %v47_v19 }
  0x20   :  { %481 = vmatpush.xpose.msk.msra.mxu0 %vm150_vm0, %v46_v20  ;;  %527 = vmatpush.xpose.msk.msra.mxu1 %vm150_vm0, %v46_v20 }
  0x21   :  { %528 = vmatpush.xpose.msk.msra.mxu2 %vm150_vm0, %v46_v20  ;;  %529 = vmatpush.xpose.msk.msra.mxu3 %vm150_vm0, %v46_v20 }
  0x22   :  { %142 = vperm.xlu2 %557, %v68_v21  }
  0x23   :  { %137 = vperm.xlu1 %556, %v67_v22   ;;  %132 = vperm.xlu0 %555, %v66_v23  }
  0x24   :  { %482 = vmatpush.xpose.msk.msra.mxu0 %vm150_vm0, %v45_v24  ;;  %530 = vmatpush.xpose.msk.msra.mxu1 %vm150_vm0, %v45_v24 }
  0x25   :  { %531 = vmatpush.xpose.msk.msra.mxu2 %vm150_vm0, %v45_v24  ;;  %532 = vmatpush.xpose.msk.msra.mxu3 %vm150_vm0, %v45_v24 }
  0x28   :  { %483 = vmatpush.xpose.msk.msra.mxu0 %vm150_vm0, %v44_v25  ;;  %533 = vmatpush.xpose.msk.msra.mxu1 %vm150_vm0, %v44_v25 }
  0x29   :  { %534 = vmatpush.xpose.msk.msra.mxu2 %vm150_vm0, %v44_v25  ;;  %535 = vmatpush.xpose.msk.msra.mxu3 %vm150_vm0, %v44_v25 }
  0x2a   :  { %351 = vperm.xlu2 %557, %v329_v26  }
  0x2b   :  { %346 = vperm.xlu1 %556, %v328_v27   ;;  %147 = vperm.xlu0 %555, %v69_v28  }
  0x2c   :  { %484 = vmatpush.xpose.msk.msra.mxu0 %vm150_vm0, %v43_v29  ;;  %536 = vmatpush.xpose.msk.msra.mxu1 %vm150_vm0, %v43_v29 }
  0x2d   :  { %537 = vmatpush.xpose.msk.msra.mxu2 %vm150_vm0, %v43_v29  ;;  %538 = vmatpush.xpose.msk.msra.mxu3 %vm150_vm0, %v43_v29 }
  0x30   :  { %485 = vmatpush.xpose.msk.msra.mxu0 %vm150_vm0, %v42_v31  ;;  %539 = vmatpush.xpose.msk.msra.mxu1 %vm150_vm0, %v42_v31 }
  0x31   :  { %540 = vmatpush.xpose.msk.msra.mxu2 %vm150_vm0, %v42_v31  ;;  %541 = vmatpush.xpose.msk.msra.mxu3 %vm150_vm0, %v42_v31 }
  0x32   :  { %366 = vperm.xlu2 %557, %v332_v32  }
  0x33   :  { %361 = vperm.xlu1 %556, %v331_v33   ;;  %356 = vperm.xlu0 %555, %v330_v34  }
  0x34   :  { %486 = vmatpush.xpose.msk.msra.mxu0 %vm150_vm0, %v41_v35  ;;  %542 = vmatpush.xpose.msk.msra.mxu1 %vm150_vm0, %v41_v35 }
  0x35   :  { %543 = vmatpush.xpose.msk.msra.mxu2 %vm150_vm0, %v41_v35  ;;  %544 = vmatpush.xpose.msk.msra.mxu3 %vm150_vm0, %v41_v35 }
  0x38   :  { %487 = vmatpush.xpose.msk.msra.mxu0 %vm150_vm0, %v40_v36  ;;  %545 = vmatpush.xpose.msk.msra.mxu1 %vm150_vm0, %v40_v36 }
  0x39   :  { %546 = vmatpush.xpose.msk.msra.mxu2 %vm150_vm0, %v40_v36  ;;  %547 = vmatpush.xpose.msk.msra.mxu3 %vm150_vm0, %v40_v36 }
  0x3a   :  { %381 = vperm.xlu2 %557, %v335_v37  }
  0x3b   :  { %376 = vperm.xlu1 %556, %v334_v38   ;;  %371 = vperm.xlu0 %555, %v333_v39  }
  0x3c   :  { %488 = vmatpush.xpose.msk.msra.mxu0 %vm150_vm0, %v39_v40  ;;  %548 = vmatpush.xpose.msk.msra.mxu1 %vm150_vm0, %v39_v40 }
  0x3d   :  { %549 = vmatpush.xpose.msk.msra.mxu2 %vm150_vm0, %v39_v40  ;;  %550 = vmatpush.xpose.msk.msra.mxu3 %vm150_vm0, %v39_v40 }
  0x40   :  { %489 = vmatpush.xpose.msk.msra.mxu0 %vm150_vm0, %v38_v41  ;;  %551 = vmatpush.xpose.msk.msra.mxu1 %vm150_vm0, %v38_v41 }
  0x41   :  { %552 = vmatpush.xpose.msk.msra.mxu2 %vm150_vm0, %v38_v41  ;;  %553 = vmatpush.xpose.msk.msra.mxu3 %vm150_vm0, %v38_v41 }
  0x42   :  { %396 = vperm.xlu2 %557, %v338_v42  }
  0x43   :  { %490 = vmatmul.msk.f32.vlgmr.msra.gmra.mxu0 %vm150_vm0, %v22_v43  ;;  %494 = vmatmul.msk.f32.vlgmr.msra.gmra.mxu1 %vm150_vm0, %v26_v44 }
  0x44   :  { %498 = vmatmul.msk.f32.vlgmr.msra.gmra.mxu2 %vm150_vm0, %v30_v45  ;;  %502 = vmatmul.msk.f32.vlgmr.msra.gmra.mxu3 %vm150_vm0, %v34_v46 }
  0x45   :  { %391 = vperm.xlu1 %556, %v337_v47   ;;  %386 = vperm.xlu0 %555, %v336_v48  }
  0x4a   :  { %411 = vperm.xlu2 %557, %v341_v49  }
  0x4b   :  { %491 = vmatmul.msk.f32.gmra.mxu0 %vm150_vm0, %v23_v50  ;;  %495 = vmatmul.msk.f32.gmra.mxu1 %vm150_vm0, %v27_v51 }
  0x4c   :  { %499 = vmatmul.msk.f32.gmra.mxu2 %vm150_vm0, %v31_v52  ;;  %503 = vmatmul.msk.f32.gmra.mxu3 %vm150_vm0, %v35_v53 }
  0x4d   :  { %406 = vperm.xlu1 %556, %v340_v54   ;;  %401 = vperm.xlu0 %555, %v339_v55  }
  0x52   :  { %464 = vperm.xlu2 %557, %v461_v56  }
  0x53   :  { %492 = vmatmul.msk.f32.gmra.mxu0 %vm150_vm0, %v24_v57  ;;  %496 = vmatmul.msk.f32.gmra.mxu1 %vm150_vm0, %v28_v58 }
  0x54   :  { %500 = vmatmul.msk.f32.gmra.mxu2 %vm150_vm0, %v32_v59  ;;  %504 = vmatmul.msk.f32.gmra.mxu3 %vm150_vm0, %v36_v60 }
  0x55   :  { %421 = vperm.xlu1 %556, %v343_v61   ;;  %416 = vperm.xlu0 %555, %v342_v62  }
  0x5b   :  { %493 = vmatmul.msk.f32.gmra.mxu0 %vm150_vm0, %v25_v63  ;;  %497 = vmatmul.msk.f32.gmra.mxu1 %vm150_vm0, %v29_v0 }
  0x5c   :  { %501 = vmatmul.msk.f32.gmra.mxu2 %vm150_vm0, %v33_v1  ;;  %505 = vmatmul.msk.f32.gmra.mxu3 %vm150_vm0, %v37_v2  ;;  %v93_v5 = vpop.permute.xlu2 %92 }
  0x64   :  { %v98_v8 = vpop.permute.xlu2 %97 }
  0x6c   :  { %v113_v11 = vpop.permute.xlu2 %112 }
  0x74   :  { %v864_v14 = vpop.permute.xlu2 %127 }
  0x75   :  { %v73_v3 = vpop.permute.xlu0 %72  ;;  %v83_v4 = vpop.permute.xlu1 %82 }
  0x7c   :  { %v870_v17 = vpop.permute.xlu2 %142 }
  0x7d   :  { %v78_v6 = vpop.permute.xlu0 %77  ;;  %v88_v7 = vpop.permute.xlu1 %87 }
  0x84   :  { %v352_v22 = vpop.permute.xlu2 %351 }
  0x85   :  { %v103_v9 = vpop.permute.xlu0 %102  ;;  %v108_v10 = vpop.permute.xlu1 %107 }
  0x8c   :  { %v367_v35 = vpop.permute.xlu2 %366 }
  0x8d   :  { %v118_v12 = vpop.permute.xlu0 %117  ;;  %v123_v13 = vpop.permute.xlu1 %122 }
  0x94   :  { %v382_v55 = vpop.permute.xlu2 %381 }
  0x95   :  { %v866_v15 = vpop.permute.xlu0 %132  ;;  %v868_v16 = vpop.permute.xlu1 %137 }
  0x9d   :  { %v872_v20 = vpop.permute.xlu0 %147  ;;  %v347_v21 = vpop.permute.xlu1 %346 }
  0xa5   :  { %v357_v26 = vpop.permute.xlu0 %356  ;;  %v362_v27 = vpop.permute.xlu1 %361 }
  0xad   :  { %v372_v37 = vpop.permute.xlu0 %371  ;;  %v377_v40 = vpop.permute.xlu1 %376 }
  0xb7   :  { %v387_v60 = vpop.permute.xlu0 %386  ;;  %v392_v1 = vpop.permute.xlu1 %391 }
  0xc0   :  { %v264_v18 = vpop.f32.mrf.mxu0  ;;  %v276_v19 = vpop.f32.mrf.mxu1 }
  0xc1   :  { %v265_v33 = vadd.f32 %v264_v18, %v73_v3  ;;  %v277_v42 = vadd.f32 %v276_v19, %v93_v5 }
  0xc3   :  { %v312_v38 = vmax.f32 %v265_v33, 0.0  ;;  %v316_v51 = vmax.f32 %v277_v42, 0.0  ;;  %v407_v33 = vpop.permute.xlu1 %406 }
  0xc5   :  { %v424_v46 = vmul.f32 %v347_v21, %v312_v38  ;;  %v428_v61 = vmul.f32 %v367_v35, %v316_v51 }
  0xc7   :  { %v288_v23 = vpop.f32.mrf.mxu2  ;;  %v300_v28 = vpop.f32.mrf.mxu3 }
  0xc8   :  { %v267_v24 = vpop.f32.mrf.mxu0  ;;  %v279_v25 = vpop.f32.mrf.mxu1  ;;  %v289_v62 = vadd.f32 %v288_v23, %v113_v11  ;;  %v301_v23 = vadd.f32 %v300_v28, %v866_v15 }
  0xc9   :  { %v268_v29 = vadd.f32 %v267_v24, %v78_v6  ;;  %v280_v47 = vadd.f32 %v279_v25, %v98_v8  ;;  %v397_v25 = vpop.permute.xlu2 %396 }
  0xca   :  { %v320_v8 = vmax.f32 %v289_v62, 0.0 }
  0xcb   :  { %v313_v36 = vmax.f32 %v268_v29, 0.0  ;;  %v317_v56 = vmax.f32 %v280_v47, 0.0  ;;  %v402_v29 = vpop.permute.xlu0 %401 }
  0xcc   :  { %v432_v11 = vmul.f32 %v387_v60, %v320_v8 }
  0xcd   :  { %v425_v43 = vmul.f32 %v352_v22, %v313_v36  ;;  %v429_v3 = vmul.f32 %v372_v37, %v317_v56 }
  0xcf   :  { %v291_v30 = vpop.f32.mrf.mxu2  ;;  %v303_v41 = vpop.f32.mrf.mxu3  ;;  %v440_v52 = vadd.f32 %v425_v43, %v424_v46 }
  0xd0   :  { %v270_v31 = vpop.f32.mrf.mxu0  ;;  %v282_v32 = vpop.f32.mrf.mxu1 }
  0xd1   :  { %v271_v34 = vadd.f32 %v270_v31, %v83_v4  ;;  %v283_v53 = vadd.f32 %v282_v32, %v103_v9  ;;  %v292_v4 = vadd.f32 %v291_v30, %v118_v12  ;;  %v304_v30 = vadd.f32 %v303_v41, %v868_v16  ;;  %v412_v43 = vpop.permute.xlu2 %411 }
  0xd3   :  { %v314_v39 = vmax.f32 %v271_v34, 0.0  ;;  %v318_v63 = vmax.f32 %v283_v53, 0.0  ;;  %v321_v21 = vmax.f32 %v292_v4, 0.0  ;;  %v324_v34 = vmax.f32 %v301_v23, 0.0 }
  0xd5   :  { %v426_v48 = vmul.f32 %v357_v26, %v314_v39  ;;  %v430_v9 = vmul.f32 %v377_v40, %v318_v63  ;;  %v433_v12 = vmul.f32 %v392_v1, %v321_v21  ;;  %v436_v28 = vmul.f32 %v407_v33, %v324_v34 }
  0xd7   :  { %v294_v44 = vpop.f32.mrf.mxu2  ;;  %v441_v57 = vadd.f32 %v440_v52, %v426_v48  ;;  %v306_v2 = vpop.f32.mrf.mxu3 }
  0xd8   :  { %v273_v45 = vpop.f32.mrf.mxu0  ;;  %v285_v50 = vpop.f32.mrf.mxu1  ;;  %v295_v18 = vadd.f32 %v294_v44, %v123_v13  ;;  %v307_v36 = vadd.f32 %v306_v2, %v870_v17 }
  0xd9   :  { %v274_v49 = vadd.f32 %v273_v45, %v88_v7  ;;  %v286_v59 = vadd.f32 %v285_v50, %v108_v10  ;;  %v417_v45 = vpop.permute.xlu0 %416  ;;  %v422_v48 = vpop.permute.xlu1 %421 }
  0xda   :  { %v322_v26 = vmax.f32 %v295_v18, 0.0  ;;  %v326_v40 = vmax.f32 %v307_v36, 0.0 }
  0xdb   :  { %v315_v54 = vmax.f32 %v274_v49, 0.0  ;;  %v319_v6 = vmax.f32 %v286_v59, 0.0 }
  0xdc   :  { %v434_v35 = vmul.f32 %v397_v25, %v322_v26  ;;  %v438_v46 = vmul.f32 %v417_v45, %v326_v40 }
  0xdd   :  { %v427_v58 = vmul.f32 %v362_v27, %v315_v54  ;;  %v431_v22 = vmul.f32 %v382_v55, %v319_v6  ;;  %v465_v55 = vpop.permute.xlu2 %464 }
  0xde   :  { %v467_v56 = vperm.slane %v465_v55, 0 }
  0xdf   :  { %v442_v0 = vadd.f32 %v441_v57, %v427_v58  ;;  %v297_v7 = vpop.f32.mrf.mxu2  ;;  %v309_v13 = vpop.f32.mrf.mxu3 }
  0xe0   :  { %v298_v10 = vadd.f32 %v297_v7, %v864_v14  ;;  %v325_v14 = vmax.f32 %v304_v30, 0.0  ;;  %v310_v15 = vadd.f32 %v309_v13, %v872_v20 }
  0xe1   :  { %v443_v5 = vadd.f32 %v442_v0, %v428_v61 }
  0xe2   :  { %v323_v32 = vmax.f32 %v298_v10, 0.0  ;;  %v437_v44 = vmul.f32 %v412_v43, %v325_v14  ;;  %v327_v41 = vmax.f32 %v310_v15, 0.0 }
  0xe3   :  { %v444_v19 = vadd.f32 %v443_v5, %v429_v3 }
  0xe4   :  { %v435_v38 = vmul.f32 %v402_v29, %v323_v32  ;;  %v439_v49 = vmul.f32 %v422_v48, %v327_v41 }
  0xe5   :  { %v445_v24 = vadd.f32 %v444_v19, %v430_v9 }
  0xe7   :  { %v446_v27 = vadd.f32 %v445_v24, %v431_v22 }
  0xe9   :  { %v447_v31 = vadd.f32 %v446_v27, %v432_v11 }
  0xeb   :  { %v448_v37 = vadd.f32 %v447_v31, %v433_v12 }
  0xed   :  { %v449_v39 = vadd.f32 %v448_v37, %v434_v35 }
  0xef   :  { %v450_v42 = vadd.f32 %v449_v39, %v435_v38 }
  0xf1   :  { %v451_v16 = vadd.f32 %v450_v42, %v436_v28 }
  0xf3   :  { %v452_v47 = vadd.f32 %v451_v16, %v437_v44 }
  0xf5   :  { %v453_v50 = vadd.f32 %v452_v47, %v438_v46 }
  0xf7   :  { %v454_v17 = vadd.f32 %v453_v50, %v439_v49 }
  0xf9   :  { %v455_v51 = vrot.slane %v454_v17, 4 }
  0xfb   :  { %v456_v52 = vadd.f32 %v455_v51, %v454_v17 }
  0xfd   :  { %v457_v53 = vrot.slane %v456_v52, 2 }
  0xff   :  { %v458_v54 = vadd.f32 %v457_v53, %v456_v52 }
 0x101   :  { %v459_v20 = vrot.slane %v458_v54, 1 }
 0x103   :  { %v460_v57 = vadd.f32 %v459_v20, %v458_v54 }
 0x105   :  { %v468_v58 = vadd.f32 %v467_v56, %v460_v57 }
 0x107   :  { %469 = vst [vmem:[%s887_s5] sm:$0x1] %v468_v58 }

</bundles_post_ra>
